<compile_context>
chip_gen: v6e
topology: v6e:2x2x1
jax: 0.10.0
libtpu: 0.0.40
codegen_flags: <defaults>
</compile_context>

<pallas_src>
import functools

import jax
import jax.numpy as jnp
from jax import lax
from jax.experimental import pallas as pl
from jax.experimental.pallas import tpu as pltpu


def _round_up(x, m):
    return (x + m - 1) // m * m


def _oim_loss_kernel(x_ref, lut_ref, tgt_ref, logits_ref, nll_ref,
                     m_sc, l_sc, t_sc, *, scalar, c_real):
    # x_ref:      (B_TILE, F_PAD)   matmul dtype (f32 or bf16)
    # lut_ref:    (C_TILE, F_PAD)   matmul dtype
    # tgt_ref:    (B_TILE, 1)       int32
    # logits_ref: (B_TILE, C_TILE)  f32 out (per-tile)
    # nll_ref:    (B_TILE, 1)       f32 out (written on last class tile)
    # m_sc/l_sc/t_sc: (B_TILE, 1)   f32 VMEM scratch (running max / sum / tgt)
    kc = pl.program_id(1)
    num_kc = pl.num_programs(1)

    # Reset the online-softmax state at the start of each class-tile sweep.
    @pl.when(kc == 0)
    def _():
        m_sc[...] = jnp.full(m_sc.shape, -jnp.inf, dtype=m_sc.dtype)
        l_sc[...] = jnp.zeros(l_sc.shape, dtype=l_sc.dtype)
        t_sc[...] = jnp.zeros(t_sc.shape, dtype=t_sc.dtype)

    x = x_ref[...]        # (B_TILE, F_PAD)
    lut = lut_ref[...]    # (C_TILE, F_PAD)

    # logits_tile = (x @ lut.T) * scalar.  Contract the feature dim of both
    # operands directly (no in-kernel .T), f32 accumulation on the MXU.
    logits = lax.dot_general(
        x, lut, (((1,), (1,)), ((), ())),
        preferred_element_type=jnp.float32) * jnp.float32(scalar)

    # Store this lane-dense logits tile (padded classes hold zeros; the
    # wrapper slices them off).
    logits_ref[...] = logits.astype(logits_ref.dtype)

    b_tile, c_tile = logits.shape
    col = (lax.broadcasted_iota(jnp.int32, (b_tile, c_tile), 1)
           + kc * c_tile)                        # global class indices
    valid = col < c_real                         # mask padded class columns
    masked = jnp.where(valid, logits, -jnp.inf)

    # Target logit: each target falls into exactly one class tile.
    tgt = tgt_ref[...]                           # (B_TILE, 1) int32
    t_sc[...] += jnp.sum(jnp.where(col == tgt, logits, 0.0),
                         axis=-1, keepdims=True)

    # Online softmax accumulation (running max / rescaled running sum).
    m_prev = m_sc[...]
    m_new = jnp.maximum(m_prev, jnp.max(masked, axis=-1, keepdims=True))
    alpha = jnp.exp(m_prev - m_new)
    l_sc[...] = alpha * l_sc[...] + jnp.sum(jnp.exp(masked - m_new),
                                            axis=-1, keepdims=True)
    m_sc[...] = m_new

    # Finalize per-example NLL on the last class tile only.
    @pl.when(kc == num_kc - 1)
    def _():
        lse = m_sc[...] + jnp.log(l_sc[...])
        nll_ref[...] = lse - t_sc[...]


def oim_loss(inputs, targets, lut, scalar=1.0, *,
             b_tile=128, c_tile=512, matmul_dtype=None):
    """Pallas implementation of OIMLoss.forward.

    inputs:  (B, F) float32
    targets: (B,)   integer class indices
    lut:     (C, F) float32 lookup table
    matmul_dtype: optional dtype (e.g. jnp.bfloat16) for the MXU matmul
                  operands; accumulation/softmax stay in f32.
    returns: (loss scalar f32, logits (B, C) f32)
    """
    B, F = inputs.shape
    C, F2 = lut.shape
    assert F == F2, "inputs and lut feature dims must match"

    # Lane / MXU-K: pad the feature dim to a multiple of 128.
    f_pad = _round_up(max(F, 128), 128)
    # Batch tile: MXU-native up to 128 rows, multiple of 8 sublanes.
    bt = min(b_tile, _round_up(B, 8))
    b_pad = _round_up(B, bt)
    # Class tile: lane-dense multiple of 128 (unmasked logits stores).
    ct = min(c_tile, _round_up(C, 128))
    c_pad = _round_up(C, ct)

    mm_dtype = inputs.dtype if matmul_dtype is None else matmul_dtype
    x_p = jnp.zeros((b_pad, f_pad), mm_dtype).at[:B, :F].set(
        inputs.astype(mm_dtype))
    lut_p = jnp.zeros((c_pad, f_pad), mm_dtype).at[:C, :F].set(
        lut.astype(mm_dtype))
    tgt_p = jnp.zeros((b_pad, 1), jnp.int32).at[:B, 0].set(
        targets.astype(jnp.int32))

    grid = (b_pad // bt, c_pad // ct)
    kernel = functools.partial(_oim_loss_kernel,
                               scalar=float(scalar), c_real=C)

    logits_p, nll = pl.pallas_call(
        kernel,
        out_shape=(
            jax.ShapeDtypeStruct((b_pad, c_pad), jnp.float32),
            jax.ShapeDtypeStruct((b_pad, 1), jnp.float32),
        ),
        grid_spec=pltpu.PrefetchScalarGridSpec(
            num_scalar_prefetch=0,
            grid=grid,
            in_specs=[
                pl.BlockSpec((bt, f_pad), lambda bi, kc: (bi, 0)),   # inputs
                pl.BlockSpec((ct, f_pad), lambda bi, kc: (kc, 0)),   # lut
                pl.BlockSpec((bt, 1), lambda bi, kc: (bi, 0)),       # targets
            ],
            out_specs=(
                pl.BlockSpec((bt, ct), lambda bi, kc: (bi, kc)),     # logits
                pl.BlockSpec((bt, 1), lambda bi, kc: (bi, 0)),       # nll
            ),
            scratch_shapes=[
                pltpu.VMEM((bt, 1), jnp.float32),   # running max
                pltpu.VMEM((bt, 1), jnp.float32),   # running exp-sum
                pltpu.VMEM((bt, 1), jnp.float32),   # target logit
            ],
        ),
        compiler_params=pltpu.CompilerParams(
            dimension_semantics=("parallel", "arbitrary"),
        ),
    )(x_p, lut_p, tgt_p)

    logits = logits_p[:B, :C]
    # weight=None, size_average=True  ->  plain mean over the batch.
    loss = jnp.sum(nll[:B, 0]) / jnp.float32(B)
    return loss, logits


if __name__ == "__main__":
    # Small shapes consistent with OIMLoss(num_features, num_classes), chosen
    # so the padding/tiling paths are exercised (B not a multiple of 8, C not
    # a multiple of 128, multiple batch and class tiles).
    B = 12
    NUM_FEATURES = 32
    NUM_CLASSES = 200
    SCALAR = 1.0

    key = jax.random.PRNGKey(0)
    k_x, k_lut, k_t = jax.random.split(key, 3)

    inputs = jax.random.normal(k_x, (B, NUM_FEATURES), dtype=jnp.float32)
    # The PyTorch buffer starts at zeros; use unit-norm rows for a
    # non-trivial forward check.
    lut = jax.random.normal(k_lut, (NUM_CLASSES, NUM_FEATURES),
                            dtype=jnp.float32)
    lut = lut / jnp.linalg.norm(lut, axis=-1, keepdims=True)
    targets = jax.random.randint(k_t, (B,), 0, NUM_CLASSES, dtype=jnp.int32)

    # Pure-JAX reference.
    ref_logits = (inputs @ lut.T) * SCALAR
    ref_lse = jax.scipy.special.logsumexp(ref_logits, axis=-1)
    ref_loss = jnp.mean(ref_lse - ref_logits[jnp.arange(B), targets])

    # 1) Small tiles -> grid (2, 2): multi-tile online softmax + B padding.
    loss, logits = oim_loss(inputs, targets, lut, scalar=SCALAR,
                            b_tile=8, c_tile=128)
    jax.block_until_ready((loss, logits))
    assert logits.shape == (B, NUM_CLASSES)
    assert jnp.allclose(logits, ref_logits, atol=1e-4, rtol=1e-4)
    assert jnp.allclose(loss, ref_loss, atol=1e-4, rtol=1e-4)

    # 2) Default tiles (single tile per axis here).
    loss2, logits2 = oim_loss(inputs, targets, lut, scalar=SCALAR)
    jax.block_until_ready((loss2, logits2))
    assert jnp.allclose(logits2, ref_logits, atol=1e-4, rtol=1e-4)
    assert jnp.allclose(loss2, ref_loss, atol=1e-4, rtol=1e-4)

    # 3) bf16 matmul path (halves LUT HBM traffic on v6e/v7x); looser check.
    loss3, logits3 = oim_loss(inputs, targets, lut, scalar=SCALAR,
                              b_tile=8, c_tile=128,
                              matmul_dtype=jnp.bfloat16)
    jax.block_until_ready((loss3, logits3))
    assert jnp.allclose(loss3, ref_loss, atol=5e-2, rtol=5e-2)

    print("KERNEL_OK")
</pallas_src>

<mosaic_0001>
module attributes {stable_mosaic.version = 11 : i64} {
  func.func @_oim_loss_kernel(%arg0: i32, %arg1: i32, %arg2: memref<8x128xf32, #tpu.memory_space<vmem>>, %arg3: memref<128x128xf32, #tpu.memory_space<vmem>>, %arg4: memref<8x1xi32, #tpu.memory_space<vmem>>, %arg5: memref<8x128xf32, #tpu.memory_space<vmem>>, %arg6: memref<8x1xf32, #tpu.memory_space<vmem>>, %arg7: memref<8x1xf32, #tpu.memory_space<vmem>>, %arg8: memref<8x1xf32, #tpu.memory_space<vmem>>, %arg9: memref<8x1xf32, #tpu.memory_space<vmem>>) attributes {dimension_semantics = [#tpu.dimension_semantics<parallel>, #tpu.dimension_semantics<arbitrary>], iteration_bounds = array<i64: 2, 2>, scalar_prefetch = 0 : i64, scratch_operands = 3 : i64, tpu.core_type = #tpu.core_type<tc>, window_params = [{transform_indices = @transform_0, window_bounds = array<i64: 8, 128>}, {transform_indices = @transform_1, window_bounds = array<i64: 128, 128>}, {transform_indices = @transform_2, window_bounds = array<i64: 8, 1>}, {transform_indices = @transform_3, window_bounds = array<i64: 8, 128>}, {transform_indices = @transform_4, window_bounds = array<i64: 8, 1>}]} {
    %c0_i32 = arith.constant 0 : i32
    %0 = arith.cmpi eq, %arg1, %c0_i32 : i32
    %1 = arith.extui %0 : i1 to i32
    %c0_i32_0 = arith.constant 0 : i32
    %2 = arith.cmpi ne, %1, %c0_i32_0 : i32
    scf.if %2 {
      %cst_27 = arith.constant 0xFF800000 : f32
      %46 = vector.broadcast %cst_27 : f32 to vector<8x1xf32>
      %c0_28 = arith.constant 0 : index
      %c0_29 = arith.constant 0 : index
      %47 = vector.load %arg7[%c0_28, %c0_29] : memref<8x1xf32, #tpu.memory_space<vmem>>, vector<8x1xf32>
      tpu.vector_store %arg7[%c0_28, %c0_29], %46 {strides = array<i32>} : memref<8x1xf32, #tpu.memory_space<vmem>>, vector<8x1xf32>,
      %cst_30 = arith.constant 0.000000e+00 : f32
      %48 = vector.broadcast %cst_30 : f32 to vector<8x1xf32>
      %c0_31 = arith.constant 0 : index
      %c0_32 = arith.constant 0 : index
      %49 = vector.load %arg8[%c0_31, %c0_32] : memref<8x1xf32, #tpu.memory_space<vmem>>, vector<8x1xf32>
      tpu.vector_store %arg8[%c0_31, %c0_32], %48 {strides = array<i32>} : memref<8x1xf32, #tpu.memory_space<vmem>>, vector<8x1xf32>,
      %cst_33 = arith.constant 0.000000e+00 : f32
      %50 = vector.broadcast %cst_33 : f32 to vector<8x1xf32>
      %c0_34 = arith.constant 0 : index
      %c0_35 = arith.constant 0 : index
      %51 = vector.load %arg9[%c0_34, %c0_35] : memref<8x1xf32, #tpu.memory_space<vmem>>, vector<8x1xf32>
      tpu.vector_store %arg9[%c0_34, %c0_35], %50 {strides = array<i32>} : memref<8x1xf32, #tpu.memory_space<vmem>>, vector<8x1xf32>,
    } else {
    }
    %c0 = arith.constant 0 : index
    %c0_1 = arith.constant 0 : index
    %3 = vector.load %arg2[%c0, %c0_1] : memref<8x128xf32, #tpu.memory_space<vmem>>, vector<8x128xf32>
    %c0_2 = arith.constant 0 : index
    %c0_3 = arith.constant 0 : index
    %4 = vector.load %arg3[%c0_2, %c0_3] : memref<128x128xf32, #tpu.memory_space<vmem>>, vector<128x128xf32>
    %cst = arith.constant dense<0.000000e+00> : vector<8x128xf32>
    %5 = tpu.matmul %3, %4, %cst {dimension_numbers = #tpu.dot_dimension_numbers<[1], [1], [0], [0], [0, 0, 1, 0], [], []>} : vector<8x128xf32>, vector<128x128xf32>, vector<8x128xf32> -> vector<8x128xf32>
    %cst_4 = arith.constant 1.000000e+00 : f32
    %6 = vector.broadcast %cst_4 : f32 to vector<8x128xf32>
    %7 = arith.mulf %5, %6 : vector<8x128xf32>
    %c0_5 = arith.constant 0 : index
    %c0_6 = arith.constant 0 : index
    %8 = vector.load %arg5[%c0_5, %c0_6] : memref<8x128xf32, #tpu.memory_space<vmem>>, vector<8x128xf32>
    tpu.vector_store %arg5[%c0_5, %c0_6], %7 {strides = array<i32>} : memref<8x128xf32, #tpu.memory_space<vmem>>, vector<8x128xf32>,
    %9 = tpu.iota {dimensions = array<i32: 1>} : vector<8x128xi32>
    %c128_i32 = arith.constant 128 : i32
    %10 = arith.muli %arg1, %c128_i32 : i32
    %11 = vector.broadcast %10 : i32 to vector<8x128xi32>
    %12 = arith.addi %9, %11 : vector<8x128xi32>
    %c200_i32 = arith.constant 200 : i32
    %13 = vector.broadcast %c200_i32 : i32 to vector<8x128xi32>
    %14 = arith.cmpi slt, %12, %13 : vector<8x128xi32>
    %cst_7 = arith.constant 0xFF800000 : f32
    %15 = vector.broadcast %cst_7 : f32 to vector<8x128xf32>
    %16 = arith.select %14, %7, %15 : vector<8x128xi1>, vector<8x128xf32>
    %c0_8 = arith.constant 0 : index
    %c0_9 = arith.constant 0 : index
    %17 = vector.load %arg4[%c0_8, %c0_9] : memref<8x1xi32, #tpu.memory_space<vmem>>, vector<8x1xi32>
    %c0_10 = arith.constant 0 : index
    %c0_11 = arith.constant 0 : index
    %18 = vector.load %arg9[%c0_10, %c0_11] : memref<8x1xf32, #tpu.memory_space<vmem>>, vector<8x1xf32>
    %19 = vector.broadcast %17 : vector<8x1xi32> to vector<8x128xi32>
    %20 = arith.cmpi eq, %12, %19 : vector<8x128xi32>
    %cst_12 = arith.constant 0.000000e+00 : f32
    %21 = vector.broadcast %cst_12 : f32 to vector<8x128xf32>
    %22 = arith.select %20, %7, %21 : vector<8x128xi1>, vector<8x128xf32>
    %cst_13 = arith.constant dense<0.000000e+00> : vector<8xf32>
    %23 = vector.multi_reduction <add>, %22, %cst_13 [1] : vector<8x128xf32> to vector<8xf32>
    %24 = vector.shape_cast %23 : vector<8xf32> to vector<8x1xf32>
    %25 = arith.addf %18, %24 : vector<8x1xf32>
    %c0_14 = arith.constant 0 : index
    %c0_15 = arith.constant 0 : index
    %26 = vector.load %arg9[%c0_14, %c0_15] : memref<8x1xf32, #tpu.memory_space<vmem>>, vector<8x1xf32>
    tpu.vector_store %arg9[%c0_14, %c0_15], %25 {strides = array<i32>} : memref<8x1xf32, #tpu.memory_space<vmem>>, vector<8x1xf32>,
    %c0_16 = arith.constant 0 : index
    %c0_17 = arith.constant 0 : index
    %27 = vector.load %arg7[%c0_16, %c0_17] : memref<8x1xf32, #tpu.memory_space<vmem>>, vector<8x1xf32>
    %cst_18 = arith.constant dense<0xFF800000> : vector<8xf32>
    %28 = vector.multi_reduction <maximumf>, %16, %cst_18 [1] : vector<8x128xf32> to vector<8xf32>
    %29 = vector.shape_cast %28 : vector<8xf32> to vector<8x1xf32>
    %30 = arith.maximumf %27, %29 : vector<8x1xf32>
    %31 = arith.subf %27, %30 : vector<8x1xf32>
    %32 = math.exp %31 : vector<8x1xf32>
    %c0_19 = arith.constant 0 : index
    %c0_20 = arith.constant 0 : index
    %33 = vector.load %arg8[%c0_19, %c0_20] : memref<8x1xf32, #tpu.memory_space<vmem>>, vector<8x1xf32>
    %34 = arith.mulf %32, %33 : vector<8x1xf32>
    %35 = vector.broadcast %30 : vector<8x1xf32> to vector<8x128xf32>
    %36 = arith.subf %16, %35 : vector<8x128xf32>
    %37 = math.exp %36 : vector<8x128xf32>
    %cst_21 = arith.constant dense<0.000000e+00> : vector<8xf32>
    %38 = vector.multi_reduction <add>, %37, %cst_21 [1] : vector<8x128xf32> to vector<8xf32>
    %39 = vector.shape_cast %38 : vector<8xf32> to vector<8x1xf32>
    %40 = arith.addf %34, %39 : vector<8x1xf32>
    %c0_22 = arith.constant 0 : index
    %c0_23 = arith.constant 0 : index
    %41 = vector.load %arg8[%c0_22, %c0_23] : memref<8x1xf32, #tpu.memory_space<vmem>>, vector<8x1xf32>
    tpu.vector_store %arg8[%c0_22, %c0_23], %40 {strides = array<i32>} : memref<8x1xf32, #tpu.memory_space<vmem>>, vector<8x1xf32>,
    %c0_24 = arith.constant 0 : index
    %c0_25 = arith.constant 0 : index
    %42 = vector.load %arg7[%c0_24, %c0_25] : memref<8x1xf32, #tpu.memory_space<vmem>>, vector<8x1xf32>
    tpu.vector_store %arg7[%c0_24, %c0_25], %30 {strides = array<i32>} : memref<8x1xf32, #tpu.memory_space<vmem>>, vector<8x1xf32>,
    %c1_i32 = arith.constant 1 : i32
    %43 = arith.cmpi eq, %arg1, %c1_i32 : i32
    %44 = arith.extui %43 : i1 to i32
    %c0_i32_26 = arith.constant 0 : i32
    %45 = arith.cmpi ne, %44, %c0_i32_26 : i32
    scf.if %45 {
      %c0_27 = arith.constant 0 : index
      %c0_28 = arith.constant 0 : index
      %46 = vector.load %arg7[%c0_27, %c0_28] : memref<8x1xf32, #tpu.memory_space<vmem>>, vector<8x1xf32>
      %c0_29 = arith.constant 0 : index
      %c0_30 = arith.constant 0 : index
      %47 = vector.load %arg8[%c0_29, %c0_30] : memref<8x1xf32, #tpu.memory_space<vmem>>, vector<8x1xf32>
      %48 = math.log %47 : vector<8x1xf32>
      %49 = arith.addf %46, %48 : vector<8x1xf32>
      %c0_31 = arith.constant 0 : index
      %c0_32 = arith.constant 0 : index
      %50 = vector.load %arg9[%c0_31, %c0_32] : memref<8x1xf32, #tpu.memory_space<vmem>>, vector<8x1xf32>
      %51 = arith.subf %49, %50 : vector<8x1xf32>
      %c0_33 = arith.constant 0 : index
      %c0_34 = arith.constant 0 : index
      %52 = vector.load %arg6[%c0_33, %c0_34] : memref<8x1xf32, #tpu.memory_space<vmem>>, vector<8x1xf32>
      tpu.vector_store %arg6[%c0_33, %c0_34], %51 {strides = array<i32>} : memref<8x1xf32, #tpu.memory_space<vmem>>, vector<8x1xf32>,
    } else {
    }
    return
  }
  func.func @transform_0(%arg0: i32, %arg1: i32) -> (i32, i32) {
    %c0_i32 = arith.constant 0 : i32
    %c0_i32_0 = arith.constant 0 : i32
    return %arg0, %c0_i32 : i32, i32
  }
  func.func @transform_1(%arg0: i32, %arg1: i32) -> (i32, i32) {
    %c0_i32 = arith.constant 0 : i32
    %c0_i32_0 = arith.constant 0 : i32
    return %arg1, %c0_i32 : i32, i32
  }
  func.func @transform_2(%arg0: i32, %arg1: i32) -> (i32, i32) {
    %c0_i32 = arith.constant 0 : i32
    %c0_i32_0 = arith.constant 0 : i32
    return %arg0, %c0_i32 : i32, i32
  }
  func.func @transform_3(%arg0: i32, %arg1: i32) -> (i32, i32) {
    %c0_i32 = arith.constant 0 : i32
    return %arg0, %arg1 : i32, i32
  }
  func.func @transform_4(%arg0: i32, %arg1: i32) -> (i32, i32) {
    %c0_i32 = arith.constant 0 : i32
    %c0_i32_0 = arith.constant 0 : i32
    return %arg0, %c0_i32 : i32, i32
  }
}

</mosaic_0001>

<bundles_post_ra>
// kernel: tpu_custom_call.1
= control target key start
LH: loop header
LB: loop body
LE: loop exit
PB: predicated region body
PF: predicated region fallthrough
CT: control target
= control target key end

     0   :  { %10 = vsyncpa [#allocation6], 0  ;;  %s1194_s0 = inlined_call_operand.vmem [shape: f32[16,128], index: 0, kind: input, shape index: {}]   ;;  %s1195_s1 = inlined_call_operand.hbm [shape: f32[256,128], index: 1, kind: input, shape index: {}]   ;;  %s1196_s2 = inlined_call_operand.vmem [shape: s32[16,1], index: 2, kind: input, shape index: {}]   ;;  %s1197_s3 = inlined_call_operand.hbm [shape: f32[16,256], index: 3, kind: output, shape index: {0}]   ;;  %s1198_s4 = inlined_call_operand.vmem [shape: f32[16,1], index: 4, kind: output, shape index: {1}]  }
   0x1   :  { %12 = vsyncpa [#allocation6 + $0x1], 0 }
   0x2   :  { %13 = vsyncpa [#allocation7], 0 }
   0x3   :  { %15 = vsyncpa [#allocation7 + $0x1], 0  ;;  %s954_s15 = smov 0   ;;  %s956_s16 = smov 0  }
   0x4   :  { %s958_s17 = smov 0   ;;  %s960_s18 = smov 0  }
   0x5   :  { %s962_s19 = smov 0   ;;  %s964_s20 = smov 0  }
   0x6   :  { %s966_s21 = smov 0   ;;  %s968_s22 = smov 0  }
   0x7   :  { %s970_s23 = smov 0   ;;  %s972_s24 = smov 0  }
   0x8   :  { %s974_s25 = smov 0  }
   0x9 LB: > { %1204 = sst [smem:[#allocation11_spill]] %s910_s23  ;;  %s579_s26 = sadd.s32 4294967295, %s918_s25   ;;  %s918_s25 = sphi %s974_s25, %s21_s25   ;;  %s914_s24 = sphi %s972_s24, %s1217_s24   ;;  %s910_s23 = sphi %s970_s23, %s1216_s23   ;;  %s906_s22 = sphi %s968_s22, %s1215_s22   ;;  %s902_s21 = sphi %s966_s21, %s1214_s21   ;;  %s898_s20 = sphi %s964_s20, %s1223_s20   ;;  %s894_s19 = sphi %s962_s19, %s1222_s19   ;;  %s890_s18 = sphi %s960_s18, %s1221_s18   ;;  %s886_s17 = sphi %s958_s17, %s1220_s17   ;;  %s882_s16 = sphi %s956_s16, %s1219_s16   ;;  %s878_s15 = sphi %s954_s15, %s1218_s15  }
   0xa   : > { %1205 = sst [smem:[#allocation12_spill]] %s914_s24  ;;  %s580_s27 = sadd.s32 4294967294, %s918_s25  }
   0xb   : > { %s30_s28 = sadd.s32 1, %s910_s23  ;;  %s33_s29 = sadd.s32 1, %s914_s24 }
   0xc   : > { %p31_p0 = scmp.ge.s32.totalorder %s30_s28, 2  ;;  %s66_s30 = sadd.s32 1, %s898_s20 }
   0xd   : > { %p73_p1 = scmp.ne.s32.totalorder %s898_s20, %s894_s19  ;;  %p74_p2 = scmp.eq.s32.totalorder %s918_s25, 0 }
   0xe   : > { %s1225_s28 = smov (%p31_p0, %s30_s28), 0  ;;  %s1227_s29 = smov (!%p31_p0, %s33_s29), %s914_s24 }
   0xf   : > { %1206 = sst [smem:[#allocation13_spill]] %s1225_s28  ;;  %s63_s5 = ssub.s32 %s910_s23, %s1225_s28 }
  0x10   : > { %p1020_p3 = por %p74_p2, %p73_p1  ;;  %p35_p4 = scmp.ge.s32.totalorder %s1227_s29, 2 }
  0x11   : > { %p64_p5 = scmp.eq.s32.totalorder %s63_s5, 0  ;;  %p79_p6 = scmp.ne.s32.totalorder %s894_s19, %s890_s18 }
  0x12   : > { %p80_p7 = scmp.eq.s32.totalorder %s579_s26, 0  ;;  %s1229_s29 = smov (%p35_p4, %s1227_s29), 0 }
  0x13   : > { %1208 = sst [smem:[#allocation14_spill]] %s1229_s29  ;;  %s115_s9 = ssub.s32 %s914_s24, %s1229_s29 }
  0x14   : > { %s1028_s7 = scalar_select %p64_p5, %s898_s20, %s66_s30  }
  0x15   : > { %p1030_p8 = por %p80_p7, %p79_p6  ;;  %s117_s10 = sor.u32 %s115_s9, %s63_s5 }
  0x16   : > { %s120_s11 = sadd.s32 1, %s886_s17  ;;  %p118_p9 = scmp.eq.s32.totalorder %s117_s10, 0 }
  0x17   : > { %p130_p10 = scmp.ne.s32.totalorder %s886_s17, %s882_s16  ;;  %p131_p11 = scmp.eq.s32.totalorder %s579_s26, 3 }
  0x18   : > { %p136_p12 = scmp.ne.s32.totalorder %s882_s16, %s878_s15  ;;  %p137_p0 = scmp.eq.s32.totalorder %s580_s27, 3 }
  0x19   : > { %s1042_s12 = scalar_select %p118_p9, %s886_s17, %s120_s11  }
  0x1a   : > { %p1044_p13 = por %p131_p11, %p130_p10  ;;  %p665_p1 = scmp.lt.s32.totalorder %s918_s25, 4 }
  0x1b   : > { %p1049_p2 = por %p137_p0, %p136_p12  ;;  %s190_s18 = sand.u32 1, %s898_s20  }
  0x1c   : > { %s583_s30 = sshll.u32 %s190_s18, 7  ;;  %s600_s5 = sshll.u32 %s910_s23, 11 }
  0x1d   : > { %s200_s26 = scalar_lea.hbm %s1195_s1, %s600_s5  ;;  %s194_s29 = scalar_lea.vmem [#allocation5], %s583_s30 }
  0x1e   : > { %s201_s11 = sshll.u32 %s194_s29, 4  ;;  %p1060_p4 = pnand %p665_p1, %p1020_p3  ;;  %s202_s11 = int_to_ptr.vmem [resolvable:$true] %s201_s11 }
  0x1f   : > { %p586_p5 = scmp.ge.s32.totalorder %s918_s25, 1  ;;  %s191_s27 = scalar_lea.sflag [#allocation6], %s190_s18 }
  0x20   : > { %p772_p6 = pneg %p1060_p4  ;;  %s783_s24 = scalar_lea.vmem %s202_s11, 2048 }
  0x21   : > { %p784_p7 = scmp.ne.s32.totalorder %s202_s11, %s783_s24  ;;  %s920_s23 = smov [#allocation5]  }
  0x22   : > { %s788_s9 = sshll.u32 %s920_s23, 4  ;;  %s789_s9 = int_to_ptr.vmem [resolvable:$false] %s788_s9 }
  0x23   : > { %p786_p9 = pnand %p784_p7, %p772_p6  ;;  %s790_s30 = scalar_lea.vmem %s789_s9, 4096 }
  0x24   : > { %p791_p11 = scmp.lt.s32.totalorder %s202_s11, %s789_s9  ;;  %p792_p12 = scmp.lt.s32.totalorder %s790_s30, %s783_s24 }
  0x25   : > { %p787_p10 = pneg %p786_p9 }
  0x26   : > { %p793_p0 = por %p792_p12, %p791_p11 }
  0x28   : > { %p794_p3 = pnand %p793_p0, %p787_p10 }
  0x2a   : > { %797 = shalt.err (!%p794_p3)
}
  0x2b   : > { %s921_s29 = smov 128   ;;  %s922_s6 = smov 8  }
  0x2c   : > { %660 = dma.hbm_to_vmem [thread:$0]  (!%p1060_p4), %s200_s26, 2048, %s202_s11, %s191_s27, %s921_s29, %s921_s29, %s922_s6  }
  0x2d   : > { %p216_p1 = scmp.lt.s32.totalorder %s918_s25, 5 }
  0x2f   : > { %p217_p6 = pnand %p586_p5, %p216_p1 }
  0x30   : > { %s222_s23 = sand.u32 (!%p217_p6), 1, %s894_s19  }
  0x31   : > { %220 = sbr.rel (%p217_p6) target bundleno = 801 (0x321), region = 32  ;;  %s587_s18 = sshll.u32 (!%p217_p6), %s222_s23, 7 }
  0x32   : > { %s223_s5 = scalar_lea.sflag (!%p217_p6), [#allocation6], %s222_s23  ;;  %s1073_s24 = scalar_lea.vmem (!%p217_p6), [#allocation5], %s587_s18 }
  0x36   : > { %869 = dma.done.wait (%p1030_p8), %s223_s5, 2048  }
  0x37   : > { %871 = vsyncadd (%p1030_p8), %s223_s5, 4294965248  ;;  %s1203_s28 = sand.u32 1, %s882_s16   ;;  %p263_p4 = scmp.lt.s32.totalorder %s906_s22, 1 }
  0x38   : > { %s1083_s10 = sshll.u32 %s1203_s28, 3  ;;  %p592_p8 = scmp.ne.s32.totalorder %s902_s21, 0 }
  0x39   : > { %s264_s26 = scalar_select %p263_p4, %s906_s22, 1 }
  0x3a   : > { %s256_s28 = scalar_lea.vmem [#allocation8], %s1083_s10  ;;  %279 = sbr.rel (%p592_p8) target bundleno = 66 (0x42), region = 40 }
  0x3b   : > { %s1086_s11 = sshll.u32 %s264_s26, 3 }
  0x3c   : > { %s266_s8 = scalar_lea.vmem %s1194_s0, %s1086_s11  ;;  %s271_s6 = scalar_lea.vmem %s1196_s2, %s1086_s11 }
  0x3d   : > { %s275_s5 = scalar_lea.vmem %s1198_s4, %s1086_s11 }
  0x3f   : > { %vm280_vm0 = vcmask 7168   ;;  %v923_v0 = vmov -inf   ;;  %v924_v1 = vmov 0.0  }
  0x40   : > { %281 = vst.msk [vmem:[#allocation2] sm:$0xff] %vm280_vm0, %v923_v0  ;;  %282 = vst.msk [vmem:[#allocation3] sm:$0xff] %vm280_vm0, %v924_v1 }
  0x41   : > { %283 = vst.msk [vmem:[#allocation4] sm:$0xff] %vm280_vm0, %v924_v1 }
  0x42 PF: > { %v300_v2 = vld [vmem:[%s1073_s24 + $0x78] sm:$0xff]  ;;  %v925_v3 = vmov 0.0   ;;  %vm926_vm1 = vmmov 0   ;;  %v927_v4 = vmov 0   ;;  %v299_v5 = vld [vmem:[%s1073_s24 + $0x70] sm:$0xff]  ;;  %v379_v6 = vld [vmem:[%s271_s6] sm:$0xff]  ;;  %v372_v22 = vlaneseq }
  0x43   : > { %618 = vmatprep.subr.mxu0 %v925_v3  ;;  %650 = vmatprep.mubr.msk.f32.mxu0 %vm926_vm1, %v925_v3  ;;  %v298_v7 = vld [vmem:[%s1073_s24 + $0x68] sm:$0xff]  ;;  %v297_v8 = vld [vmem:[%s1073_s24 + $0x60] sm:$0xff]  ;;  %v296_v9 = vld [vmem:[%s1073_s24 + $0x58] sm:$0xff]  ;;  %s593_s9 = sshll.u32 %s902_s21, 7  ;;  %vm389_vm4 = vcmask 7168   ;;  %p594_p5 = scmp.ne.s32.totalorder %s902_s21, 1 }
  0x44   : > { %619 = vmatpush3.xpose.msra.mxu0 %v300_v2  ;;  %763 = vset.pattern.permute.xlu1 %v927_v4  ;;  %v295_v10 = vld [vmem:[%s1073_s24 + $0x50] sm:$0xff]  ;;  %v294_v11 = vld [vmem:[%s1073_s24 + $0x48] sm:$0xff]  ;;  %v293_v12 = vld [vmem:[%s1073_s24 + $0x40] sm:$0xff]  ;;  %v373_v23 = vand.u32 127, %v372_v22  ;;  %v375_v24 = vstv %s593_s9 }
  0x45   : > { %620 = vmatprep.subr.mxu0 %v925_v3  ;;  %762 = vset.pattern.permute.xlu0 %v927_v4  ;;  %v292_v13 = vld [vmem:[%s1073_s24 + $0x38] sm:$0xff]  ;;  %v291_v14 = vld [vmem:[%s1073_s24 + $0x30] sm:$0xff]  ;;  %v290_v15 = vld [vmem:[%s1073_s24 + $0x28] sm:$0xff] }
  0x46   : > { %382 = vperm.xlu1 %763, %v379_v6   ;;  %v289_v16 = vld [vmem:[%s1073_s24 + $0x20] sm:$0xff]  ;;  %v288_v17 = vld [vmem:[%s1073_s24 + $0x18] sm:$0xff]  ;;  %v287_v18 = vld [vmem:[%s1073_s24 + $0x10] sm:$0xff]  ;;  %v376_v25 = vadd.s32 %v375_v24, %v373_v23 }
  0x47   : > { %v286_v19 = vld [vmem:[%s1073_s24 + $0x8] sm:$0xff]  ;;  %v285_v20 = vld [vmem:[%s1073_s24] sm:$0xff]  ;;  %v398_v44 = vld [vmem:[#allocation3] sm:$0xff] }
  0x48   : > { %621 = vmatpush3.xpose.msra.mxu0 %v299_v5  ;;  %v284_v21 = vld [vmem:[%s266_s8] sm:$0xff]  ;;  %vm377_vm3 = vcmp.lt.s32.totalorder %v376_v25, 200  ;;  %v380_v31 = vld [vmem:[#allocation4] sm:$0xff] }
  0x49   : > { %622 = vmatprep.subr.mxu0 %v925_v3  ;;  %v391_v32 = vld [vmem:[#allocation2] sm:$0xff] }
  0x4c   : > { %623 = vmatpush3.xpose.msra.mxu0 %v298_v7 }
  0x4d   : > { %624 = vmatprep.subr.mxu0 %v925_v3 }
  0x50   : > { %625 = vmatpush3.xpose.msra.mxu0 %v297_v8 }
  0x51   : > { %626 = vmatprep.subr.mxu0 %v925_v3 }
  0x54   : > { %627 = vmatpush3.xpose.msra.mxu0 %v296_v9 }
  0x55   : > { %628 = vmatprep.subr.mxu0 %v925_v3 }
  0x58   : > { %629 = vmatpush3.xpose.msra.mxu0 %v295_v10 }
  0x59   : > { %630 = vmatprep.subr.mxu0 %v925_v3 }
  0x5c   : > { %631 = vmatpush3.xpose.msra.mxu0 %v294_v11 }
  0x5d   : > { %632 = vmatprep.subr.mxu0 %v925_v3 }
  0x60   : > { %633 = vmatpush3.xpose.msra.mxu0 %v293_v12 }
  0x61   : > { %634 = vmatprep.subr.mxu0 %v925_v3 }
  0x64   : > { %635 = vmatpush3.xpose.msra.mxu0 %v292_v13 }
  0x65   : > { %636 = vmatprep.subr.mxu0 %v925_v3 }
  0x68   : > { %637 = vmatpush3.xpose.msra.mxu0 %v291_v14 }
  0x69   : > { %638 = vmatprep.subr.mxu0 %v925_v3 }
  0x6c   : > { %639 = vmatpush3.xpose.msra.mxu0 %v290_v15 }
  0x6d   : > { %640 = vmatprep.subr.mxu0 %v925_v3 }
  0x70   : > { %641 = vmatpush3.xpose.msra.mxu0 %v289_v16 }
  0x71   : > { %642 = vmatprep.subr.mxu0 %v925_v3 }
  0x74   : > { %643 = vmatpush3.xpose.msra.mxu0 %v288_v17 }
  0x75   : > { %644 = vmatprep.subr.mxu0 %v925_v3 }
  0x78   : > { %645 = vmatpush3.xpose.msra.mxu0 %v287_v18 }
  0x79   : > { %646 = vmatprep.subr.mxu0 %v925_v3 }
  0x7c   : > { %647 = vmatpush3.xpose.msra.mxu0 %v286_v19 }
  0x7d   : > { %648 = vmatprep.subr.mxu0 %v925_v3 }
  0x80   : > { %649 = vmatpush3.xpose.msra.mxu0 %v285_v20 }
  0x83   : > { %651 = vmatmul.mubr.f32.vlgmr.msra.gmra.mxu0 %v284_v21 }
  0xc1   : > { %v383_v26 = vpop.permute.xlu1 %382 }
  0xc2   : > { %vm384_vm2 = vcmp.eq.s32.totalorder %v376_v25, %v383_v26 }
 0x143   : > { %v367_v27 = vpop.f32.mrf.mxu0 }
 0x144   : > { %371 = vst [vmem:[%s256_s28] sm:$0xff] %v367_v27  ;;  %v385_v28 = vsel %vm384_vm2, %v367_v27, 0.0  ;;  %v378_v29 = vsel %vm377_vm3, %v367_v27, -inf }
 0x145   : > { %386 = vadd.xlane.f32.xlu1 %v385_v28  ;;  %392 = vmax.xlane.f32.xlu0 %v378_v29  ;;  %v652_v30 = vpop.f32.mrf.mxu0 }
 0x1ce   : > { %v387_v33 = vpop.xlane.xlu1 %386  ;;  %v393_v34 = vpop.xlane.xlu0 %392 }
 0x1cf   : > { %v388_v35 = vadd.f32 %v387_v33, %v380_v31  ;;  %v394_v36 = vmax.f32 %v391_v32, %v393_v34 }
 0x1d1   : > { %390 = vst.msk [vmem:[#allocation4] sm:$0xff] %vm389_vm4, %v388_v35  ;;  %v395_v37 = vsub.f32 %v391_v32, %v394_v36  ;;  %412 = vst.msk [vmem:[#allocation2] sm:$0xff] %vm389_vm4, %v394_v36  ;;  %402 = vperm.xlu0 %762, %v394_v36  }
 0x1d3   : > { %v396_v42 = vmul.f32 1.442695, %v395_v37 }
 0x24c   : > { %v403_v38 = vpop.permute.xlu0 %402 }
 0x24d   : > { %v405_v39 = vsub.f32 %v378_v29, %v403_v38 }
 0x24f   : > { %v406_v40 = vmul.f32 1.442695, %v405_v39 }
 0x251   : > { %764 = vpow2.f32 %v406_v40 }
 0x252   : > { %766 = vpow2.f32 %v396_v42 }
 0x25e   : > { %v765_v41 = vpop.eup %764 }
 0x25f   : > { %408 = vadd.xlane.f32.xlu1 %v765_v41  ;;  %v767_v43 = vpop.eup %766 }
 0x260   : > { %v399_v45 = vmul.f32 %v767_v43, %v398_v44 }
 0x2e7   : > { %416 = sbr.rel (%p594_p5) target bundleno = 776 (0x308), region = 44 }
 0x2e8   : > { %v409_v46 = vpop.xlane.xlu1 %408 }
 0x2e9   : > { %v410_v47 = vadd.f32 %v409_v46, %v399_v45 }
 0x2eb   : > { %411 = vst.msk [vmem:[#allocation3] sm:$0xff] %vm389_vm4, %v410_v47 }
 0x2ec   : > { %v417_v50 = vld [vmem:[#allocation2] sm:$0xff]  ;;  %v422_v52 = vld [vmem:[#allocation4] sm:$0xff] }
 0x2f2   : > { %v418_v48 = vld [vmem:[#allocation3] sm:$0xff] }
 0x2f3   : > { %768 = vlog2.f32 %v418_v48 }
 0x300   : > { %v769_v49 = vpop.eup %768 }
 0x301   : > { %v420_v51 = vmul.f32 0.6931472, %v769_v49 }
 0x303   : > { %v421_v53 = vadd.f32 %v420_v51, %v417_v50 }
 0x305   : > { %v423_v54 = vsub.f32 %v421_v53, %v422_v52 }
 0x307   : > { %424 = vst.msk [vmem:[%s275_s5] sm:$0xff] %vm389_vm4, %v423_v54 }
 0x308 PF: > { %s596_s30 = sshll.u32 %s906_s22, 1  ;;  %s445_s6 = sshll.u32 %s256_s28, 4  ;;  %s446_s6 = int_to_ptr.vmem [resolvable:$true] %s445_s6 }
 0x309   : > { %s441_s29 = sadd.s32 %s902_s21, %s596_s30  ;;  %s1213_s9 = sand.u32 1, %s882_s16  }
 0x30a   : > { %s597_s23 = sshll.u32 %s441_s29, 7  ;;  %s426_s24 = scalar_lea.sflag [#allocation7], %s1213_s9 }
 0x30b   : > { %s443_s27 = scalar_lea.hbm %s1197_s3, %s597_s23  ;;  %s798_s11 = scalar_lea.vmem %s446_s6, 128 }
 0x30c   : > { %p799_p7 = scmp.ne.s32.totalorder %s446_s6, %s798_s11  ;;  %s928_s5 = smov [#allocation8]  }
 0x30d   : > { %s802_s8 = sshll.u32 %s928_s5, 4  ;;  %s803_s8 = int_to_ptr.vmem [resolvable:$false] %s802_s8 }
 0x30e   : > { %p800_p9 = pnand %p799_p7, %p1044_p13  ;;  %s804_s22 = scalar_lea.vmem %s803_s8, 256 }
 0x30f   : > { %p805_p11 = scmp.lt.s32.totalorder %s446_s6, %s803_s8  ;;  %p806_p12 = scmp.lt.s32.totalorder %s804_s22, %s798_s11 }
 0x310   : > { %p801_p10 = pneg %p800_p9 }
 0x311   : > { %p807_p0 = por %p806_p12, %p805_p11 }
 0x313   : > { %p808_p3 = pnand %p807_p0, %p801_p10 }
 0x315   : > { %811 = shalt.err (!%p808_p3)
}
 0x316   : > { %s812_s21 = scalar_lea.hbm %s443_s27, 128  ;;  %s816_s30 = scalar_lea.hbm %s1197_s3, 512 }
 0x317   : > { %p813_p1 = scmp.ne.s32.totalorder %s443_s27, %s812_s21  ;;  %p817_p8 = scmp.lt.s32.totalorder %s443_s27, %s1197_s3 }
 0x318   : > { %p818_p5 = scmp.lt.s32.totalorder %s816_s30, %s812_s21 }
 0x319   : > { %p814_p6 = pnand %p813_p1, %p1044_p13 }
 0x31a   : > { %p819_p7 = por %p818_p5, %p817_p8 }
 0x31b   : > { %p815_p4 = pneg %p814_p6 }
 0x31d   : > { %p820_p9 = pnand %p819_p7, %p815_p4 }
 0x31f   : > { %823 = shalt.err (!%p820_p9)
}
 0x320   : > { %655 = dma.vmem_to_hbm [thread:$0]  (%p1044_p13), %s446_s6, 128, %s443_s27, %s426_s24  }
 0x321 PF: > { %p666_p10 = scmp.ge.s32.totalorder %s918_s25, 2  ;;  %s460_s18 = sand.u32 1, %s878_s15  }
 0x322   : > { %s461_s26 = scalar_lea.sflag [#allocation7], %s460_s18 }
 0x323   : > { %p662_p11 = pnand %p666_p10, %p1049_p2 }
 0x325   : > { %p663_p12 = pneg %p662_p11 }
 0x327   : > { %873 = dma.done.wait (%p663_p12), %s461_s26, 128  }
 0x328   : > { %875 = vsyncadd (%p663_p12), %s461_s26, 4294967168  ;;  %s21_s25 = sadd.s32 1, %s918_s25   ;;  %s1214_s21 = sld [smem:[#allocation11_spill]] }
 0x329   : > { %p18_p0 = scmp.ge.s32.totalorder %s21_s25, 6   ;;  %s1215_s22 = sld [smem:[#allocation12_spill]] }
 0x32a   : > { %s1216_s23 = sld [smem:[#allocation13_spill]]  ;;  %s1218_s15 = smov %s882_s16 }
 0x32b   : > { %s1217_s24 = sld [smem:[#allocation14_spill]]  ;;  %s1219_s16 = smov %s886_s17 }
 0x32c   : > { %s1220_s17 = smov %s1042_s12  ;;  %s1221_s18 = smov %s894_s19 }
 0x32d   : > { %s1222_s19 = smov %s898_s20  ;;  %s1223_s20 = smov %s1028_s7 }
 0x32e   :  { %20 = sbr.rel (!%p18_p0) target bundleno = 9 (0x9), region = 103 }
 0x333   :  { %473 = vsyncpa [#allocation6], 1 }
 0x334   :  { %475 = vsyncpa [#allocation6 + $0x1], 1 }
 0x335   :  { %476 = vsyncpa [#allocation7], 1 }
 0x336   :  { %478 = vsyncpa [#allocation7 + $0x1], 1 }

</bundles_post_ra>
